<compile_context>
chip_gen: v7x
topology: tpu7x:2x2x1
jax: 0.10.0
libtpu: 0.0.40
codegen_flags: <defaults>
</compile_context>

<pallas_src>
import functools

import jax
import jax.numpy as jnp
from jax.experimental import pallas as pl
from jax.experimental.pallas import tpu as pltpu

# ---------------- toy config (roles match the module's hidden/intermediate sizes) -----
HIDDEN = 32
INTER = 64
SEQ = 8

FUSE_MIN_TOKENS = 257          # T >= this -> prefill -> fused single kernel


def _round_up(x: int, m: int) -> int:
    return ((x + m - 1) // m) * m


def _device_config():
    """Per-TPU-generation tile preferences and scoped-VMEM budget."""
    kind = ""
    try:
        kind = jax.devices()[0].device_kind.lower()
    except Exception:
        pass
    if "v7" in kind:
        # 64 MiB physical VMEM per core -> smaller reduction tile, 48 MiB scoped cap.
        return dict(tm=512, tn=512, tk=512, vmem_limit=48 * 1024 * 1024)
    # v4 / v5e / v5p / v6e: 128 MiB physical VMEM.
    return dict(tm=512, tn=512, tk=1024, vmem_limit=64 * 1024 * 1024)


_CFG = _device_config()


def _pick_model_tile(dim: int, pref: int, align: int = 256) -> int:
    """Largest multiple-of-`align` tile <= pref dividing dim; full dim if small/ragged."""
    if dim <= align:
        return dim
    t = max(align, (pref // align) * align)
    while t >= align:
        if t <= dim and dim % t == 0:
            return t
        t -= align
    # TODO(synk): ragged model dims fall back to a single full-dim block.
    return dim


def _pick_token_tile(t: int, pref: int) -> int:
    """Token tile; callers zero-pad T up to a multiple of this tile."""
    if t >= pref:
        return pref
    return _round_up(t, 8)


def _pad_tokens(x, tm):
    t = x.shape[0]
    t_pad = _round_up(t, tm)
    if t_pad != t:
        x = jnp.pad(x, ((0, t_pad - t), (0, 0)))
    return x


def _weight_spec(block_shape, index_map, n_reduction_steps):
    """BlockSpec for a streamed weight operand; 3-deep buffering when it can help."""
    if n_reduction_steps >= 3:
        try:
            return pl.BlockSpec(block_shape, index_map, pipeline_mode=pl.Buffered(3))
        except TypeError:   # very old jax without pipeline_mode kwarg
            pass
    return pl.BlockSpec(block_shape, index_map)


# ================= fused prefill kernel: gate/up matmul + SiLU*up + down-proj =========
def _fused_mlp_kernel(x_ref, gate_w_ref, up_w_ref, down_w_ref, o_ref,
                      acc_g_ref, acc_u_ref, acc_o_ref):
    j = pl.program_id(1)
    k = pl.program_id(2)
    last_j = pl.num_programs(1) - 1
    last_k = pl.num_programs(2) - 1

    @pl.when(jnp.logical_and(j == 0, k == 0))
    def _():
        acc_o_ref[...] = jnp.zeros_like(acc_o_ref)

    @pl.when(k == 0)
    def _():
        acc_g_ref[...] = jnp.zeros_like(acc_g_ref)
        acc_u_ref[...] = jnp.zeros_like(acc_u_ref)

    x = x_ref[...]
    acc_g_ref[...] += jnp.dot(x, gate_w_ref[...], preferred_element_type=jnp.float32)
    acc_u_ref[...] += jnp.dot(x, up_w_ref[...], preferred_element_type=jnp.float32)

    @pl.when(k == last_k)
    def _():
        g = acc_g_ref[...]                                # f32 accumulators
        u = acc_u_ref[...]
        act = ((g * jax.nn.sigmoid(g)) * u).astype(down_w_ref.dtype)   # SiLU in f32
        acc_o_ref[...] += jnp.dot(act, down_w_ref[...],
                                  preferred_element_type=jnp.float32)

    @pl.when(jnp.logical_and(j == last_j, k == last_k))
    def _():
        o_ref[...] = acc_o_ref[...].astype(o_ref.dtype)


def fused_mlp(x, gate_w, up_w, down_w):
    """x: [T, H]; gate_w/up_w: [H, I]; down_w: [I, H] (pre-transposed) -> [T, H]."""
    t_orig, h = x.shape
    inter = gate_w.shape[1]
    tm = _pick_token_tile(t_orig, _CFG["tm"])
    tn = _pick_model_tile(inter, _CFG["tn"])
    tk = _pick_model_tile(h, _CFG["tk"], align=128)
    x = _pad_tokens(x, tm)
    t = x.shape[0]
    n_k = h // tk

    itemsize = jnp.dtype(x.dtype).itemsize
    cost = pl.CostEstimate(
        flops=6 * t * h * inter,                 # gate + up + down matmuls
        transcendentals=t * inter,               # sigmoid
        bytes_accessed=(x.size + gate_w.size + up_w.size + down_w.size + t * h)
        * itemsize,
    )
    out = pl.pallas_call(
        _fused_mlp_kernel,
        out_shape=jax.ShapeDtypeStruct((t, h), x.dtype),
        grid_spec=pltpu.PrefetchScalarGridSpec(
            num_scalar_prefetch=0,
            grid=(t // tm, inter // tn, n_k),
            in_specs=[
                pl.BlockSpec((tm, tk), lambda i, j, k: (i, k)),      # x
                _weight_spec((tk, tn), lambda i, j, k: (k, j), n_k),  # gate_w
                _weight_spec((tk, tn), lambda i, j, k: (k, j), n_k),  # up_w
                pl.BlockSpec((tn, h), lambda i, j, k: (j, 0)),        # down_w strip
            ],
            out_specs=pl.BlockSpec((tm, h), lambda i, j, k: (i, 0)),  # resident output
            scratch_shapes=[
                pltpu.VMEM((tm, tn), jnp.float32),   # gate accumulator
                pltpu.VMEM((tm, tn), jnp.float32),   # up accumulator
                pltpu.VMEM((tm, h), jnp.float32),    # down-proj accumulator
            ],
        ),
        compiler_params=pltpu.CompilerParams(
            dimension_semantics=("parallel", "arbitrary", "arbitrary"),
            vmem_limit_bytes=_CFG["vmem_limit"],
        ),
        cost_estimate=cost,
    )(x, gate_w, up_w, down_w)
    return out[:t_orig]


# ================= split (decode) path: gate_up+SiLU kernel, then down-proj ===========
def _gate_up_silu_kernel(x_ref, gate_w_ref, up_w_ref, o_ref, acc_g_ref, acc_u_ref):
    k = pl.program_id(2)

    @pl.when(k == 0)
    def _():
        acc_g_ref[...] = jnp.zeros_like(acc_g_ref)
        acc_u_ref[...] = jnp.zeros_like(acc_u_ref)

    x = x_ref[...]
    acc_g_ref[...] += jnp.dot(x, gate_w_ref[...], preferred_element_type=jnp.float32)
    acc_u_ref[...] += jnp.dot(x, up_w_ref[...], preferred_element_type=jnp.float32)

    @pl.when(k == pl.num_programs(2) - 1)
    def _():
        g = acc_g_ref[...]
        u = acc_u_ref[...]
        o_ref[...] = ((g * jax.nn.sigmoid(g)) * u).astype(o_ref.dtype)


def gate_up_silu(x, gate_w, up_w):
    """x: [T, H] (T already tile-padded); gate_w/up_w: [H, I] -> [T, I]."""
    t, h = x.shape
    inter = gate_w.shape[1]
    tm = _pick_token_tile(t, _CFG["tm"])
    tn = _pick_model_tile(inter, _CFG["tn"])
    tk = _pick_model_tile(h, _CFG["tk"], align=128)
    n_k = h // tk
    itemsize = jnp.dtype(x.dtype).itemsize
    cost = pl.CostEstimate(
        flops=4 * t * h * inter,
        transcendentals=t * inter,
        bytes_accessed=(x.size + gate_w.size + up_w.size + t * inter) * itemsize,
    )
    return pl.pallas_call(
        _gate_up_silu_kernel,
        out_shape=jax.ShapeDtypeStruct((t, inter), x.dtype),
        grid_spec=pltpu.PrefetchScalarGridSpec(
            num_scalar_prefetch=0,
            grid=(t // tm, inter // tn, n_k),
            in_specs=[
                pl.BlockSpec((tm, tk), lambda i, j, k: (i, k)),
                _weight_spec((tk, tn), lambda i, j, k: (k, j), n_k),
                _weight_spec((tk, tn), lambda i, j, k: (k, j), n_k),
            ],
            out_specs=pl.BlockSpec((tm, tn), lambda i, j, k: (i, j)),
            scratch_shapes=[
                pltpu.VMEM((tm, tn), jnp.float32),
                pltpu.VMEM((tm, tn), jnp.float32),
            ],
        ),
        compiler_params=pltpu.CompilerParams(
            dimension_semantics=("parallel", "parallel", "arbitrary"),
            vmem_limit_bytes=_CFG["vmem_limit"],
        ),
        cost_estimate=cost,
    )(x, gate_w, up_w)


def _matmul_kernel(x_ref, w_ref, o_ref, acc_ref):
    k = pl.program_id(2)

    @pl.when(k == 0)
    def _():
        acc_ref[...] = jnp.zeros_like(acc_ref)

    acc_ref[...] += jnp.dot(x_ref[...], w_ref[...], preferred_element_type=jnp.float32)

    @pl.when(k == pl.num_programs(2) - 1)
    def _():
        o_ref[...] = acc_ref[...].astype(o_ref.dtype)


def linear(x, w_t):
    """x: [T, K] (T already tile-padded); w_t: [K, N] (pre-transposed, no bias)."""
    t, kdim = x.shape
    n = w_t.shape[1]
    tm = _pick_token_tile(t, _CFG["tm"])
    tn = _pick_model_tile(n, _CFG["tn"])
    tk = _pick_model_tile(kdim, _CFG["tk"], align=128)
    n_k = kdim // tk
    itemsize = jnp.dtype(x.dtype).itemsize
    cost = pl.CostEstimate(
        flops=2 * t * kdim * n,
        transcendentals=0,
        bytes_accessed=(x.size + w_t.size + t * n) * itemsize,
    )
    return pl.pallas_call(
        _matmul_kernel,
        out_shape=jax.ShapeDtypeStruct((t, n), x.dtype),
        grid_spec=pltpu.PrefetchScalarGridSpec(
            num_scalar_prefetch=0,
            grid=(t // tm, n // tn, n_k),
            in_specs=[
                pl.BlockSpec((tm, tk), lambda i, j, k: (i, k)),
                _weight_spec((tk, tn), lambda i, j, k: (k, j), n_k),
            ],
            out_specs=pl.BlockSpec((tm, tn), lambda i, j, k: (i, j)),
            scratch_shapes=[pltpu.VMEM((tm, tn), jnp.float32)],
        ),
        compiler_params=pltpu.CompilerParams(
            dimension_semantics=("parallel", "parallel", "arbitrary"),
            vmem_limit_bytes=_CFG["vmem_limit"],
        ),
        cost_estimate=cost,
    )(x, w_t)


# ---------------- LlamaMLP forward ----------------
def llama_mlp(x, params, *, fuse=None):
    """x: [T, H]; params: gate_w [H, I], up_w [H, I], down_w [I, H] (pre-transposed)."""
    t = x.shape[0]
    if fuse is None:
        fuse = t >= FUSE_MIN_TOKENS
    if fuse:
        # Prefill: single fused kernel; the [T, I] activation never touches HBM.
        return fused_mlp(x, params["gate_w"], params["up_w"], params["down_w"])
    # Decode: two kernels, j-axis stays "parallel" (splits weight streaming across TCs).
    tm = _pick_token_tile(t, _CFG["tm"])
    xp = _pad_tokens(x, tm)
    act = gate_up_silu(xp, params["gate_w"], params["up_w"])   # [Tp, I], SiLU fused
    out = linear(act, params["down_w"])                        # [Tp, H]
    return out[:t]


def init_params(key):
    k_gate, k_up, k_down = jax.random.split(key, 3)

    def dense(k, shape):
        return (jax.random.normal(k, shape, jnp.float32) * 0.02).astype(jnp.bfloat16)

    return {
        "gate_w": dense(k_gate, (HIDDEN, INTER)),   # gate_up_proj.W[:I].T
        "up_w": dense(k_up, (HIDDEN, INTER)),       # gate_up_proj.W[I:].T
        "down_w": dense(k_down, (INTER, HIDDEN)),   # down_proj.W.T
    }


def _reference(x, params):
    # pure-JAX reference of the PyTorch forward (f32 math on the same bf16 values)
    xf = x.astype(jnp.float32)
    g = xf @ params["gate_w"].astype(jnp.float32)
    u = xf @ params["up_w"].astype(jnp.float32)
    act = (g * jax.nn.sigmoid(g)) * u
    return act @ params["down_w"].astype(jnp.float32)


if __name__ == "__main__":
    key = jax.random.PRNGKey(0)
    pkey, xkey = jax.random.split(key)
    params = init_params(pkey)
    x = jax.random.normal(xkey, (SEQ, HIDDEN), jnp.float32).astype(jnp.bfloat16)

    ref = _reference(x, params)

    fwd_decode = jax.jit(functools.partial(llama_mlp, fuse=False))   # split path
    fwd_prefill = jax.jit(functools.partial(llama_mlp, fuse=True))   # fused path

    out_d = fwd_decode(x, params)
    out_p = fwd_prefill(x, params)
    jax.block_until_ready((out_d, out_p))

    assert out_d.shape == (SEQ, HIDDEN)
    assert out_p.shape == (SEQ, HIDDEN)
    err_d = float(jnp.max(jnp.abs(out_d.astype(jnp.float32) - ref)))
    err_p = float(jnp.max(jnp.abs(out_p.astype(jnp.float32) - ref)))
    assert err_d < 5e-2, f"split-path max abs error {err_d}"
    assert err_p < 5e-2, f"fused-path max abs error {err_p}"
    print("KERNEL_OK")
</pallas_src>

<mosaic_0001>
module attributes {stable_mosaic.version = 11 : i64} {
  func.func @_matmul_kernel(%arg0: i32, %arg1: i32, %arg2: i32, %arg3: memref<8x64xbf16, #tpu.memory_space<vmem>>, %arg4: memref<64x32xbf16, #tpu.memory_space<vmem>>, %arg5: memref<8x32xbf16, #tpu.memory_space<vmem>>, %arg6: memref<8x32xf32, #tpu.memory_space<vmem>>) attributes {dimension_semantics = [#tpu.dimension_semantics<parallel>, #tpu.dimension_semantics<parallel>, #tpu.dimension_semantics<arbitrary>], iteration_bounds = array<i64: 1, 1, 1>, scalar_prefetch = 0 : i64, scratch_operands = 1 : i64, tpu.core_type = #tpu.core_type<tc>, window_params = [{transform_indices = @transform_0, window_bounds = array<i64: 8, 64>}, {transform_indices = @transform_1, window_bounds = array<i64: 64, 32>}, {transform_indices = @transform_2, window_bounds = array<i64: 8, 32>}]} {
    %c0_i32 = arith.constant 0 : i32
    %0 = arith.cmpi eq, %arg2, %c0_i32 : i32
    %1 = arith.extui %0 : i1 to i32
    %c0_i32_0 = arith.constant 0 : i32
    %2 = arith.cmpi ne, %1, %c0_i32_0 : i32
    scf.if %2 {
      %cst_10 = arith.constant 0.000000e+00 : f32
      %12 = vector.broadcast %cst_10 : f32 to vector<8x32xf32>
      %c0_11 = arith.constant 0 : index
      %c0_12 = arith.constant 0 : index
      %13 = vector.load %arg6[%c0_11, %c0_12] : memref<8x32xf32, #tpu.memory_space<vmem>>, vector<8x32xf32>
      tpu.vector_store %arg6[%c0_11, %c0_12], %12 {strides = array<i32>} : memref<8x32xf32, #tpu.memory_space<vmem>>, vector<8x32xf32>,
    } else {
    }
    %c0 = arith.constant 0 : index
    %c0_1 = arith.constant 0 : index
    %3 = vector.load %arg6[%c0, %c0_1] : memref<8x32xf32, #tpu.memory_space<vmem>>, vector<8x32xf32>
    %c0_2 = arith.constant 0 : index
    %c0_3 = arith.constant 0 : index
    %4 = vector.load %arg3[%c0_2, %c0_3] : memref<8x64xbf16, #tpu.memory_space<vmem>>, vector<8x64xbf16>
    %c0_4 = arith.constant 0 : index
    %c0_5 = arith.constant 0 : index
    %5 = vector.load %arg4[%c0_4, %c0_5] : memref<64x32xbf16, #tpu.memory_space<vmem>>, vector<64x32xbf16>
    %cst = arith.constant dense<0.000000e+00> : vector<8x32xf32>
    %6 = tpu.matmul %4, %5, %cst {dimension_numbers = #tpu.dot_dimension_numbers<[1], [0], [0], [1], [0, 0, 1, 1], [], []>} : vector<8x64xbf16>, vector<64x32xbf16>, vector<8x32xf32> -> vector<8x32xf32>
    %7 = arith.addf %3, %6 : vector<8x32xf32>
    %c0_6 = arith.constant 0 : index
    %c0_7 = arith.constant 0 : index
    %8 = vector.load %arg6[%c0_6, %c0_7] : memref<8x32xf32, #tpu.memory_space<vmem>>, vector<8x32xf32>
    tpu.vector_store %arg6[%c0_6, %c0_7], %7 {strides = array<i32>} : memref<8x32xf32, #tpu.memory_space<vmem>>, vector<8x32xf32>,
    %c0_i32_8 = arith.constant 0 : i32
    %9 = arith.cmpi eq, %arg2, %c0_i32_8 : i32
    %10 = arith.extui %9 : i1 to i32
    %c0_i32_9 = arith.constant 0 : i32
    %11 = arith.cmpi ne, %10, %c0_i32_9 : i32
    scf.if %11 {
      %c0_10 = arith.constant 0 : index
      %c0_11 = arith.constant 0 : index
      %12 = vector.load %arg6[%c0_10, %c0_11] : memref<8x32xf32, #tpu.memory_space<vmem>>, vector<8x32xf32>
      %13 = arith.truncf %12 : vector<8x32xf32> to vector<8x32xbf16>
      %c0_12 = arith.constant 0 : index
      %c0_13 = arith.constant 0 : index
      %14 = vector.load %arg5[%c0_12, %c0_13] : memref<8x32xbf16, #tpu.memory_space<vmem>>, vector<8x32xbf16>
      tpu.vector_store %arg5[%c0_12, %c0_13], %13 {strides = array<i32>} : memref<8x32xbf16, #tpu.memory_space<vmem>>, vector<8x32xbf16>,
    } else {
    }
    return
  }
  func.func @transform_0(%arg0: i32, %arg1: i32, %arg2: i32) -> (i32, i32) {
    %c0_i32 = arith.constant 0 : i32
    return %arg0, %arg2 : i32, i32
  }
  func.func @transform_1(%arg0: i32, %arg1: i32, %arg2: i32) -> (i32, i32) {
    %c0_i32 = arith.constant 0 : i32
    return %arg2, %arg1 : i32, i32
  }
  func.func @transform_2(%arg0: i32, %arg1: i32, %arg2: i32) -> (i32, i32) {
    %c0_i32 = arith.constant 0 : i32
    return %arg0, %arg1 : i32, i32
  }
}

module attributes {stable_mosaic.version = 11 : i64} {
  func.func @_gate_up_silu_kernel(%arg0: i32, %arg1: i32, %arg2: i32, %arg3: memref<8x32xbf16, #tpu.memory_space<vmem>>, %arg4: memref<32x64xbf16, #tpu.memory_space<vmem>>, %arg5: memref<32x64xbf16, #tpu.memory_space<vmem>>, %arg6: memref<8x64xbf16, #tpu.memory_space<vmem>>, %arg7: memref<8x64xf32, #tpu.memory_space<vmem>>, %arg8: memref<8x64xf32, #tpu.memory_space<vmem>>) attributes {dimension_semantics = [#tpu.dimension_semantics<parallel>, #tpu.dimension_semantics<parallel>, #tpu.dimension_semantics<arbitrary>], iteration_bounds = array<i64: 1, 1, 1>, scalar_prefetch = 0 : i64, scratch_operands = 2 : i64, tpu.core_type = #tpu.core_type<tc>, window_params = [{transform_indices = @transform_0, window_bounds = array<i64: 8, 32>}, {transform_indices = @transform_1, window_bounds = array<i64: 32, 64>}, {transform_indices = @transform_2, window_bounds = array<i64: 32, 64>}, {transform_indices = @transform_3, window_bounds = array<i64: 8, 64>}]} {
    %c0_i32 = arith.constant 0 : i32
    %0 = arith.cmpi eq, %arg2, %c0_i32 : i32
    %1 = arith.extui %0 : i1 to i32
    %c0_i32_0 = arith.constant 0 : i32
    %2 = arith.cmpi ne, %1, %c0_i32_0 : i32
    scf.if %2 {
      %cst_17 = arith.constant 0.000000e+00 : f32
      %17 = vector.broadcast %cst_17 : f32 to vector<8x64xf32>
      %c0_18 = arith.constant 0 : index
      %c0_19 = arith.constant 0 : index
      %18 = vector.load %arg7[%c0_18, %c0_19] : memref<8x64xf32, #tpu.memory_space<vmem>>, vector<8x64xf32>
      tpu.vector_store %arg7[%c0_18, %c0_19], %17 {strides = array<i32>} : memref<8x64xf32, #tpu.memory_space<vmem>>, vector<8x64xf32>,
      %cst_20 = arith.constant 0.000000e+00 : f32
      %19 = vector.broadcast %cst_20 : f32 to vector<8x64xf32>
      %c0_21 = arith.constant 0 : index
      %c0_22 = arith.constant 0 : index
      %20 = vector.load %arg8[%c0_21, %c0_22] : memref<8x64xf32, #tpu.memory_space<vmem>>, vector<8x64xf32>
      tpu.vector_store %arg8[%c0_21, %c0_22], %19 {strides = array<i32>} : memref<8x64xf32, #tpu.memory_space<vmem>>, vector<8x64xf32>,
    } else {
    }
    %c0 = arith.constant 0 : index
    %c0_1 = arith.constant 0 : index
    %3 = vector.load %arg3[%c0, %c0_1] : memref<8x32xbf16, #tpu.memory_space<vmem>>, vector<8x32xbf16>
    %c0_2 = arith.constant 0 : index
    %c0_3 = arith.constant 0 : index
    %4 = vector.load %arg7[%c0_2, %c0_3] : memref<8x64xf32, #tpu.memory_space<vmem>>, vector<8x64xf32>
    %c0_4 = arith.constant 0 : index
    %c0_5 = arith.constant 0 : index
    %5 = vector.load %arg4[%c0_4, %c0_5] : memref<32x64xbf16, #tpu.memory_space<vmem>>, vector<32x64xbf16>
    %cst = arith.constant dense<0.000000e+00> : vector<8x64xf32>
    %6 = tpu.matmul %3, %5, %cst {dimension_numbers = #tpu.dot_dimension_numbers<[1], [0], [0], [1], [0, 0, 1, 1], [], []>} : vector<8x32xbf16>, vector<32x64xbf16>, vector<8x64xf32> -> vector<8x64xf32>
    %7 = arith.addf %4, %6 : vector<8x64xf32>
    %c0_6 = arith.constant 0 : index
    %c0_7 = arith.constant 0 : index
    %8 = vector.load %arg7[%c0_6, %c0_7] : memref<8x64xf32, #tpu.memory_space<vmem>>, vector<8x64xf32>
    tpu.vector_store %arg7[%c0_6, %c0_7], %7 {strides = array<i32>} : memref<8x64xf32, #tpu.memory_space<vmem>>, vector<8x64xf32>,
    %c0_8 = arith.constant 0 : index
    %c0_9 = arith.constant 0 : index
    %9 = vector.load %arg8[%c0_8, %c0_9] : memref<8x64xf32, #tpu.memory_space<vmem>>, vector<8x64xf32>
    %c0_10 = arith.constant 0 : index
    %c0_11 = arith.constant 0 : index
    %10 = vector.load %arg5[%c0_10, %c0_11] : memref<32x64xbf16, #tpu.memory_space<vmem>>, vector<32x64xbf16>
    %cst_12 = arith.constant dense<0.000000e+00> : vector<8x64xf32>
    %11 = tpu.matmul %3, %10, %cst_12 {dimension_numbers = #tpu.dot_dimension_numbers<[1], [0], [0], [1], [0, 0, 1, 1], [], []>} : vector<8x32xbf16>, vector<32x64xbf16>, vector<8x64xf32> -> vector<8x64xf32>
    %12 = arith.addf %9, %11 : vector<8x64xf32>
    %c0_13 = arith.constant 0 : index
    %c0_14 = arith.constant 0 : index
    %13 = vector.load %arg8[%c0_13, %c0_14] : memref<8x64xf32, #tpu.memory_space<vmem>>, vector<8x64xf32>
    tpu.vector_store %arg8[%c0_13, %c0_14], %12 {strides = array<i32>} : memref<8x64xf32, #tpu.memory_space<vmem>>, vector<8x64xf32>,
    %c0_i32_15 = arith.constant 0 : i32
    %14 = arith.cmpi eq, %arg2, %c0_i32_15 : i32
    %15 = arith.extui %14 : i1 to i32
    %c0_i32_16 = arith.constant 0 : i32
    %16 = arith.cmpi ne, %15, %c0_i32_16 : i32
    scf.if %16 {
      %c0_17 = arith.constant 0 : index
      %c0_18 = arith.constant 0 : index
      %17 = vector.load %arg7[%c0_17, %c0_18] : memref<8x64xf32, #tpu.memory_space<vmem>>, vector<8x64xf32>
      %c0_19 = arith.constant 0 : index
      %c0_20 = arith.constant 0 : index
      %18 = vector.load %arg8[%c0_19, %c0_20] : memref<8x64xf32, #tpu.memory_space<vmem>>, vector<8x64xf32>
      %19 = arith.negf %17 : vector<8x64xf32>
      %20 = math.exp %19 : vector<8x64xf32>
      %cst_21 = arith.constant 1.000000e+00 : f32
      %21 = vector.broadcast %cst_21 : f32 to vector<8x64xf32>
      %22 = arith.addf %21, %20 : vector<8x64xf32>
      %23 = arith.divf %21, %22 : vector<8x64xf32>
      %24 = arith.mulf %17, %23 : vector<8x64xf32>
      %25 = arith.mulf %24, %18 : vector<8x64xf32>
      %26 = arith.truncf %25 : vector<8x64xf32> to vector<8x64xbf16>
      %c0_22 = arith.constant 0 : index
      %c0_23 = arith.constant 0 : index
      %27 = vector.load %arg6[%c0_22, %c0_23] : memref<8x64xbf16, #tpu.memory_space<vmem>>, vector<8x64xbf16>
      tpu.vector_store %arg6[%c0_22, %c0_23], %26 {strides = array<i32>} : memref<8x64xbf16, #tpu.memory_space<vmem>>, vector<8x64xbf16>,
    } else {
    }
    return
  }
  func.func @transform_0(%arg0: i32, %arg1: i32, %arg2: i32) -> (i32, i32) {
    %c0_i32 = arith.constant 0 : i32
    return %arg0, %arg2 : i32, i32
  }
  func.func @transform_1(%arg0: i32, %arg1: i32, %arg2: i32) -> (i32, i32) {
    %c0_i32 = arith.constant 0 : i32
    return %arg2, %arg1 : i32, i32
  }
  func.func @transform_2(%arg0: i32, %arg1: i32, %arg2: i32) -> (i32, i32) {
    %c0_i32 = arith.constant 0 : i32
    return %arg2, %arg1 : i32, i32
  }
  func.func @transform_3(%arg0: i32, %arg1: i32, %arg2: i32) -> (i32, i32) {
    %c0_i32 = arith.constant 0 : i32
    return %arg0, %arg1 : i32, i32
  }
}

</mosaic_0001>

<bundles_post_ra>
// kernel: llama_mlp.2
= control target key start
LH: loop header
LB: loop body
LE: loop exit
PB: predicated region body
PF: predicated region fallthrough
CT: control target
= control target key end

     0   :  { %8 = vsyncpa [#allocation5], 0  ;;  %s443_s0 = inlined_call_operand.hbm [shape: bf16[8,32], index: 0, kind: input, shape index: {}]   ;;  %s444_s1 = inlined_call_operand.hbm [shape: bf16[32,64], index: 1, kind: input, shape index: {}]   ;;  %s445_s2 = inlined_call_operand.hbm [shape: bf16[32,64], index: 2, kind: input, shape index: {}]   ;;  %s446_s3 = inlined_call_operand.hbm [shape: bf16[8,64], index: 3, kind: output, shape index: {}]  }
   0x1   :  { %9 = vsyncpa [#allocation8], 0 }
   0x2   :  { %10 = vsyncpa [#allocation6], 0  ;;  %s357_s12 = smov [#allocation7]   ;;  %s263_s16 = scalar_lea.hbm %s444_s1, 256 }
   0x3   :  { %s26_s13 = sshll.u32 %s357_s12, 4  ;;  %p264_p0 = scmp.ne.s32.totalorder %s444_s1, %s263_s16  ;;  %s27_s13 = int_to_ptr.vmem [resolvable:$true] %s26_s13 }
   0x4   :  { %p267_p1 = scmp.lt.u32.totalorder %s263_s16, %s444_s1 }
   0x6   :  { %p269_p2 = pnand %p267_p1, %p264_p0 }
   0x8   :  { %272 = shalt.err (!%p269_p2)
}
   0x9   :  { %s273_s21 = scalar_lea.vmem %s27_s13, 256  ;;  %p278_p4 = scmp.lt.s32.totalorder %s27_s13, %s27_s13 }
   0xa   :  { %p274_p3 = scmp.ne.s32.totalorder %s27_s13, %s273_s21  ;;  %p279_p5 = scmp.lt.s32.totalorder %s273_s21, %s273_s21 }
   0xc   :  { %p280_p6 = por %p279_p5, %p278_p4 }
   0xe   :  { %p281_p7 = pnand %p280_p6, %p274_p3 }
  0x10   :  { %284 = shalt.err (!%p281_p7)
}
  0x11   :  { %s358_s22 = smov 64   ;;  %s359_s23 = smov 4  }
  0x12   :  { %32 = dma.hbm_to_vmem [thread:$0]  %s444_s1, 256, %s27_s13, [#allocation8], %s358_s22, %s358_s22, %s359_s23  }
  0x13   :  { %s360_s26 = smov [#allocation4]   ;;  %s361_s28 = smov [#allocation9]  }
  0x14   :  { %s17_s27 = sshll.u32 %s360_s26, 4  ;;  %s38_s29 = sshll.u32 %s361_s28, 4  ;;  %s18_s27 = int_to_ptr.vmem [resolvable:$true] %s17_s27  ;;  %s39_s29 = int_to_ptr.vmem [resolvable:$true] %s38_s29 }
  0x15   :  { %s285_s5 = scalar_lea.hbm %s443_s0, 64 }
  0x16   :  { %p286_p8 = scmp.ne.s32.totalorder %s443_s0, %s285_s5  ;;  %p289_p9 = scmp.lt.u32.totalorder %s285_s5, %s443_s0 }
  0x18   :  { %p291_p10 = pnand %p289_p9, %p286_p8 }
  0x1a   :  { %294 = shalt.err (!%p291_p10)
}
  0x1b   :  { %s295_s1 = scalar_lea.vmem %s18_s27, 64  ;;  %p300_p12 = scmp.lt.s32.totalorder %s18_s27, %s18_s27 }
  0x1c   :  { %p296_p11 = scmp.ne.s32.totalorder %s18_s27, %s295_s1  ;;  %p301_p13 = scmp.lt.s32.totalorder %s295_s1, %s295_s1 }
  0x1e   :  { %p302_p0 = por %p301_p13, %p300_p12 }
  0x20   :  { %p303_p1 = pnand %p302_p0, %p296_p11 }
  0x22   :  { %306 = shalt.err (!%p303_p1)
}
  0x23   :  { %20 = dma.hbm_to_vmem [thread:$0]  %s443_s0, 64, %s18_s27, [#allocation5]  }
  0x24   :  { %s307_s14 = scalar_lea.hbm %s445_s2, 256 }
  0x25   :  { %p308_p2 = scmp.ne.s32.totalorder %s445_s2, %s307_s14  ;;  %p311_p3 = scmp.lt.u32.totalorder %s307_s14, %s445_s2 }
  0x27   :  { %p313_p4 = pnand %p311_p3, %p308_p2 }
  0x29   :  { %316 = shalt.err (!%p313_p4)
}
  0x2a   :  { %s317_s19 = scalar_lea.vmem %s39_s29, 256  ;;  %p322_p6 = scmp.lt.s32.totalorder %s39_s29, %s39_s29 }
  0x2b   :  { %p318_p5 = scmp.ne.s32.totalorder %s39_s29, %s317_s19  ;;  %p323_p7 = scmp.lt.s32.totalorder %s317_s19, %s317_s19 }
  0x2d   :  { %p324_p8 = por %p323_p7, %p322_p6 }
  0x2f   :  { %p325_p9 = pnand %p324_p8, %p318_p5 }
  0x31   :  { %328 = shalt.err (!%p325_p9)
}
  0x32   :  { %44 = dma.hbm_to_vmem [thread:$0]  %s445_s2, 256, %s39_s29, [#allocation8], %s358_s22, %s358_s22, %s359_s23  }
  0x33   :  { %351 = dma.done.wait [#allocation5], 64  }
  0x34   :  { %352 = vsyncadd [#allocation5], 4294967232 }
  0x35   :  { %353 = dma.done.wait [#allocation8], 512  }
  0x36   :  { %354 = vsyncadd [#allocation8], 4294966784  ;;  %vm59_vm0 = vcmask 523264   ;;  %v362_v0 = vmov 0.0   ;;  %vm363_vm1 = vmmov 0   ;;  %v255_v1 = vld [vmem:[#allocation7] sm:$0xff]  }
  0x37   :  { %231 = vmatprep.subr.bf16.mxu0 %v362_v0  ;;  %235 = vmatprep.mubr.msk.bf16.mxu0 %vm363_vm1, %v362_v0  ;;  %60 = vst.msk [vmem:[#allocation2] sm:$0xff] %vm59_vm0, %v362_v0  ;;  %61 = vst.msk [vmem:[#allocation3] sm:$0xff] %vm59_vm0, %v362_v0  ;;  %v256_v2 = vld [vmem:[#allocation7 + $0x8] sm:$0xff]   ;;  %v257_v3 = vld [vmem:[#allocation9] sm:$0xff]   ;;  %vm80_vm2 = vcmask 261120   ;;  %s364_s2 = smov [#allocation10]  }
  0x38   :  { %239 = vmatprep.subr.bf16.mxu1 %v362_v0  ;;  %243 = vmatprep.mubr.msk.bf16.mxu1 %vm363_vm1, %v362_v0  ;;  %v258_v4 = vld [vmem:[#allocation9 + $0x8] sm:$0xff]   ;;  %s208_s21 = sshll.u32 %s364_s2, 4  ;;  %vm200_vm3 = vcmask 519168   ;;  %s209_s21 = int_to_ptr.vmem [resolvable:$true] %s208_s21 }
  0x39   :  { %232 = vmatpush3.bf16.msra.mxu0 %v255_v1  ;;  %240 = vmatpush3.bf16.msra.mxu1 %v257_v3  ;;  %v62_v5 = vld [vmem:[#allocation4] sm:$0xf]  ;;  %s329_s22 = scalar_lea.vmem %s209_s21, 64  ;;  %p334_p11 = scmp.lt.s32.totalorder %s209_s21, %s209_s21 }
  0x3a   :  { %233 = vmatprep.subr.bf16.mxu0 %v362_v0  ;;  %241 = vmatprep.subr.bf16.mxu1 %v362_v0  ;;  %p330_p10 = scmp.ne.s32.totalorder %s209_s21, %s329_s22  ;;  %p335_p12 = scmp.lt.s32.totalorder %s329_s22, %s329_s22 }
  0x3c   :  { %p336_p13 = por %p335_p12, %p334_p11 }
  0x3d   :  { %234 = vmatpush3.bf16.msra.mxu0 %v256_v2  ;;  %242 = vmatpush3.bf16.msra.mxu1 %v258_v4 }
  0x3e   :  { %v63_v6 = vld [vmem:[#allocation2] sm:$0xff]  ;;  %v127_v10 = vld [vmem:[#allocation3] sm:$0xff]  ;;  %p337_p0 = pnand %p336_p13, %p330_p10 }
  0x40   :  { %236 = vmatmul.mubr.msk.bf16.vlgmr.msra.gmra.mrb[0].mxu0 %vm80_vm2, %v62_v5  ;;  %244 = vmatmul.mubr.msk.bf16.vlgmr.msra.gmra.mrb[0].mxu1 %vm80_vm2, %v62_v5 }
 0x113   :  { %v118_v7 = vpop.f32.mrb[0].mxu0  ;;  %v178_v13 = vpop.f32.mrb[0].mxu1 }
 0x114   :  { %v124_v8 = vadd.f32 %v118_v7, %v63_v6  ;;  %v237_v9 = vpop.f32.mrb[1].mxu0  ;;  %v184_v14 = vadd.f32 %v178_v13, %v127_v10  ;;  %v245_v15 = vpop.f32.mrb[1].mxu1 }
 0x115   :  { %v121_v11 = vpop.f32.mrb[2].mxu0  ;;  %v181_v16 = vpop.f32.mrb[2].mxu1 }
 0x116   :  { %126 = vst.msk [vmem:[#allocation2] sm:$0xff] %vm59_vm0, %v124_v8  ;;  %v238_v12 = vpop.f32.mrb[3].mxu0  ;;  %185 = vst.msk [vmem:[#allocation3] sm:$0xff] %vm59_vm0, %v184_v14  ;;  %v246_v17 = vpop.f32.mrb[3].mxu1 }
 0x11d   :  { %v189_v18 = vld [vmem:[#allocation2] sm:$0xff]  ;;  %v190_v23 = vld [vmem:[#allocation3] sm:$0xff] }
 0x11e   :  { %v224_v19 = vmul.f32 -1.442695, %v189_v18 }
 0x120   :  { %259 = vpow2.f32 %v224_v19 }
 0x12a   :  { %v260_v20 = vpop.eup %259 }
 0x12b   :  { %v194_v21 = vadd.f32 1.0, %v260_v20 }
 0x12d   :  { %261 = vrcp.f32 %v194_v21 }
 0x137   :  { %v262_v22 = vpop.eup %261 }
 0x138   :  { %v197_v24 = vmul.f32 %v262_v22, %v189_v18 }
 0x13a   :  { %v198_v25 = vmul.f32 %v197_v24, %v190_v23 }
 0x13c   :  { %v199_v26 = vpack.c.bf16 %v198_v25, %v198_v25 }
 0x13e   :  { %201 = vst.msk [vmem:[#allocation10] sm:$0xf] %vm200_vm3, %v199_v26 }
 0x13f   :  { %340 = shalt.err (!%p337_p0)
}
 0x140   :  { %s341_s25 = scalar_lea.hbm %s446_s3, 64 }
 0x141   :  { %p342_p1 = scmp.ne.s32.totalorder %s446_s3, %s341_s25  ;;  %p345_p2 = scmp.lt.u32.totalorder %s341_s25, %s446_s3 }
 0x143   :  { %p347_p3 = pnand %p345_p2, %p342_p1 }
 0x145   :  { %350 = shalt.err (!%p347_p3)
}
 0x146   :  { %211 = dma.vmem_to_hbm [thread:$0]  %s209_s21, 64, %s446_s3, [#allocation6]  }
 0x147   :  { %355 = dma.done.wait [#allocation6], 64  }
 0x148   :  { %356 = vsyncadd [#allocation6], 4294967232 }
 0x149   :  { %215 = vsyncpa [#allocation5], 1 }
 0x14a   :  { %216 = vsyncpa [#allocation8], 1 }
 0x14b   :  { %217 = vsyncpa [#allocation6], 1 }

// kernel: llama_mlp.3
= control target key start
LH: loop header
LB: loop body
LE: loop exit
PB: predicated region body
PF: predicated region fallthrough
CT: control target
= control target key end

     0   :  { %7 = vsyncpa [#allocation4], 0  ;;  %s321_s0 = inlined_call_operand.hbm [shape: bf16[8,64], index: 0, kind: input, shape index: {}]   ;;  %s322_s1 = inlined_call_operand.hbm [shape: bf16[64,32], index: 1, kind: input, shape index: {}]   ;;  %s323_s2 = inlined_call_operand.hbm [shape: bf16[8,32], index: 2, kind: output, shape index: {}]  }
   0x1   :  { %8 = vsyncpa [#allocation7], 0 }
   0x2   :  { %9 = vsyncpa [#allocation5], 0  ;;  %s254_s9 = smov [#allocation3]   ;;  %s255_s11 = smov [#allocation6]  }
   0x3   :  { %s16_s10 = sshll.u32 %s254_s9, 4  ;;  %s25_s12 = sshll.u32 %s255_s11, 4  ;;  %s17_s10 = int_to_ptr.vmem [resolvable:$true] %s16_s10  ;;  %s276_s12 = int_to_ptr.vmem [resolvable:$true] %s25_s12 }
   0x4   :  { %s182_s15 = scalar_lea.hbm %s321_s0, 64 }
   0x5   :  { %p183_p0 = scmp.ne.s32.totalorder %s321_s0, %s182_s15  ;;  %p186_p1 = scmp.lt.u32.totalorder %s182_s15, %s321_s0 }
   0x7   :  { %p188_p2 = pnand %p186_p1, %p183_p0 }
   0x9   :  { %191 = shalt.err (!%p188_p2)
}
   0xa   :  { %s192_s20 = scalar_lea.vmem %s17_s10, 64  ;;  %p197_p4 = scmp.lt.s32.totalorder %s17_s10, %s17_s10 }
   0xb   :  { %p193_p3 = scmp.ne.s32.totalorder %s17_s10, %s192_s20  ;;  %p198_p5 = scmp.lt.s32.totalorder %s192_s20, %s192_s20 }
   0xd   :  { %p199_p6 = por %p198_p5, %p197_p4 }
   0xf   :  { %p200_p7 = pnand %p199_p6, %p193_p3 }
  0x11   :  { %203 = shalt.err (!%p200_p7)
}
  0x12   :  { %19 = dma.hbm_to_vmem [thread:$0]  %s321_s0, 64, %s17_s10, [#allocation4]  }
  0x13   :  { %s204_s25 = scalar_lea.hbm %s322_s1, 512 }
  0x14   :  { %p205_p8 = scmp.ne.s32.totalorder %s322_s1, %s204_s25  ;;  %p208_p9 = scmp.lt.u32.totalorder %s204_s25, %s322_s1 }
  0x16   :  { %p210_p10 = pnand %p208_p9, %p205_p8 }
  0x18   :  { %213 = shalt.err (!%p210_p10)
}
  0x19   :  { %s214_s30 = scalar_lea.vmem %s276_s12, 512  ;;  %p219_p12 = scmp.lt.s32.totalorder %s276_s12, %s276_s12 }
  0x1a   :  { %p215_p11 = scmp.ne.s32.totalorder %s276_s12, %s214_s30  ;;  %p220_p13 = scmp.lt.s32.totalorder %s214_s30, %s214_s30 }
  0x1c   :  { %p221_p0 = por %p220_p13, %p219_p12 }
  0x1e   :  { %p222_p1 = pnand %p221_p0, %p215_p11 }
  0x20   :  { %225 = shalt.err (!%p222_p1)
}
  0x21   :  { %s256_s0 = smov 64   ;;  %s257_s3 = smov 4  }
  0x22   :  { %31 = dma.hbm_to_vmem [thread:$0]  %s322_s1, 512, %s276_s12, [#allocation7], %s256_s0, %s256_s0, %s257_s3  }
  0x23   :  { %248 = dma.done.wait [#allocation4], 64  }
  0x24   :  { %249 = vsyncadd [#allocation4], 4294967232 }
  0x25   :  { %250 = dma.done.wait [#allocation7], 512  }
  0x26   :  { %251 = vsyncadd [#allocation7], 4294966784  ;;  %vm43_vm0 = vcmask 261120   ;;  %v258_v0 = vmov 0.0   ;;  %vm259_vm1 = vmmov 0   ;;  %v178_v1 = vld [vmem:[#allocation6] sm:$0xff]  }
  0x27   :  { %159 = vmatprep.subr.bf16.mxu0 %v258_v0  ;;  %167 = vmatprep.mubr.msk.bf16.mxu0 %vm259_vm1, %v258_v0  ;;  %44 = vst.msk [vmem:[#allocation2] sm:$0xff] %vm43_vm0, %v258_v0  ;;  %v179_v2 = vld [vmem:[#allocation6 + $0x8] sm:$0xff]   ;;  %v180_v3 = vld [vmem:[#allocation6 + $0x10] sm:$0xff]   ;;  %v181_v4 = vld [vmem:[#allocation6 + $0x18] sm:$0xff]   ;;  %vm79_vm2 = vcmask 523264   ;;  %s260_s1 = smov [#allocation8]  }
  0x28   :  { %160 = vmatpush3.bf16.msra.mxu0 %v178_v1  ;;  %v46_v5 = vld [vmem:[#allocation3] sm:$0xf]  ;;  %s139_s6 = sshll.u32 %s260_s1, 4  ;;  %vm131_vm3 = vcmask 257024   ;;  %s140_s6 = int_to_ptr.vmem [resolvable:$true] %s139_s6 }
  0x29   :  { %161 = vmatprep.subr.bf16.mxu0 %v258_v0  ;;  %s226_s7 = scalar_lea.vmem %s140_s6, 64  ;;  %p231_p3 = scmp.lt.s32.totalorder %s140_s6, %s140_s6 }
  0x2a   :  { %p227_p2 = scmp.ne.s32.totalorder %s140_s6, %s226_s7  ;;  %p232_p4 = scmp.lt.s32.totalorder %s226_s7, %s226_s7 }
  0x2c   :  { %162 = vmatpush3.bf16.msra.mxu0 %v179_v2  ;;  %p233_p5 = por %p232_p4, %p231_p3 }
  0x2d   :  { %163 = vmatprep.subr.bf16.mxu0 %v258_v0 }
  0x2e   :  { %v45_v6 = vld [vmem:[#allocation2] sm:$0xff]  ;;  %p234_p6 = pnand %p233_p5, %p227_p2 }
  0x30   :  { %164 = vmatpush3.bf16.msra.mxu0 %v180_v3 }
  0x31   :  { %165 = vmatprep.subr.bf16.mxu0 %v258_v0 }
  0x34   :  { %166 = vmatpush3.bf16.msra.mxu0 %v181_v4 }
  0x37   :  { %168 = vmatmul.mubr.msk.bf16.vlgmr.msra.gmra.mrb[0].mxu0 %vm79_vm2, %v46_v5 }
 0x10a   :  { %v117_v7 = vpop.f32.mrb[0].mxu0 }
 0x10b   :  { %v123_v8 = vadd.f32 %v117_v7, %v45_v6  ;;  %v169_v9 = vpop.f32.mrb[1].mxu0 }
 0x10c   :  { %v120_v10 = vpop.f32.mrb[2].mxu0 }
 0x10d   :  { %125 = vst.msk [vmem:[#allocation2] sm:$0xff] %vm43_vm0, %v123_v8  ;;  %v170_v11 = vpop.f32.mrb[3].mxu0 }
 0x114   :  { %v129_v12 = vld [vmem:[#allocation2] sm:$0xff] }
 0x115   :  { %v130_v13 = vpack.c.bf16 %v129_v12, %v129_v12 }
 0x117   :  { %132 = vst.msk [vmem:[#allocation8] sm:$0xf] %vm131_vm3, %v130_v13 }
 0x118   :  { %237 = shalt.err (!%p234_p6)
}
 0x119   :  { %s238_s10 = scalar_lea.hbm %s323_s2, 64 }
 0x11a   :  { %p239_p7 = scmp.ne.s32.totalorder %s323_s2, %s238_s10  ;;  %p242_p8 = scmp.lt.u32.totalorder %s238_s10, %s323_s2 }
 0x11c   :  { %p244_p9 = pnand %p242_p8, %p239_p7 }
 0x11e   :  { %247 = shalt.err (!%p244_p9)
}
 0x11f   :  { %142 = dma.vmem_to_hbm [thread:$0]  %s140_s6, 64, %s323_s2, [#allocation5]  }
 0x120   :  { %252 = dma.done.wait [#allocation5], 64  }
 0x121   :  { %253 = vsyncadd [#allocation5], 4294967232 }
 0x122   :  { %146 = vsyncpa [#allocation4], 1 }
 0x123   :  { %147 = vsyncpa [#allocation7], 1 }
 0x124   :  { %148 = vsyncpa [#allocation5], 1 }

</bundles_post_ra>
